<compile_context>
chip_gen: v6e
topology: v6e:2x2x1
jax: 0.10.0
libtpu: 0.0.40
codegen_flags: <defaults>
</compile_context>

<pallas_src>
import jax
import jax.numpy as jnp
from jax.experimental import pallas as pl
from jax.experimental.pallas import tpu as pltpu

LANES = 128        # vreg lane width; only the last dim must be 128-aligned
TILE_ROWS = 4096   # (4096, 128) f32 = 2 MiB per buffer (double-buffered in/out)


def scale_shift_kernel(w_ref, b_ref, x_ref, o_ref):
    # w_ref, b_ref: (1, 1) f32 scalars in SMEM.
    # x_ref, o_ref: (tile_rows, 128) tiles in VMEM.
    w = w_ref[0, 0]
    b = b_ref[0, 0]
    o_ref[...] = (x_ref[...] * w + b).astype(o_ref.dtype)


def _scale_shift_pallas(x2d, w2, b2):
    """x2d: (rows, 128) lane-dense slab -> same-shape y = x * w + b."""
    rows, lanes = x2d.shape
    dtype = x2d.dtype
    itemsize = jnp.dtype(dtype).itemsize
    sub = 8 if itemsize == 4 else 16        # sublane multiple (f32 vs bf16 packing)

    tile_rows = min(TILE_ROWS, rows)
    if rows >= 2 * sub:
        # Guarantee >= 2 grid steps so the "parallel" axis actually shards
        # across both TensorCores on v7x (harmless on single-TC v5e/v6e).
        half = pl.cdiv(pl.cdiv(rows, 2), sub) * sub
        tile_rows = min(tile_rows, half)

    grid = (pl.cdiv(rows, tile_rows),)

    # VMEM footprint: input + output tiles, double-buffered, plus headroom.
    tile_bytes = tile_rows * lanes * itemsize
    vmem_limit = min(max(4 * tile_bytes + (1 << 20), 4 << 20), 32 << 20)

    return pl.pallas_call(
        scale_shift_kernel,
        out_shape=jax.ShapeDtypeStruct((rows, lanes), dtype),
        grid=grid,
        in_specs=[
            pl.BlockSpec(memory_space=pltpu.SMEM),                # weight (1,1)
            pl.BlockSpec(memory_space=pltpu.SMEM),                # bias   (1,1)
            pl.BlockSpec((tile_rows, lanes), lambda i: (i, 0)),   # x tile
        ],
        out_specs=pl.BlockSpec((tile_rows, lanes), lambda i: (i, 0)),
        compiler_params=pltpu.CompilerParams(
            dimension_semantics=("parallel",),
            vmem_limit_bytes=vmem_limit,
        ),
        cost_estimate=pl.CostEstimate(
            flops=2 * rows * lanes,
            transcendentals=0,
            bytes_accessed=2 * rows * lanes * itemsize,
        ),
    )(w2, b2, x2d)


def _simple_nn_forward(x, weight, bias):
    """x: (N, 1), weight: (1, 1), bias: (1,) -> (N, 1). Matches nn.Linear(1, 1)."""
    n, in_f = x.shape
    assert in_f == 1 and weight.shape == (1, 1) and bias.shape == (1,)

    compute_dtype = x.dtype if x.dtype in (jnp.bfloat16, jnp.float32) else jnp.float32
    w2 = weight.reshape(1, 1).astype(jnp.float32)
    b2 = bias.reshape(1, 1).astype(jnp.float32)
    flat = x.astype(compute_dtype).reshape(-1)

    # 128-lane-aligned prefix goes through the kernel with zero pad/slice
    # copies; a <128-element ragged tail is handled by plain XLA.
    if n % LANES == 0:
        flat_main, tail = flat, None
    elif n < LANES:
        flat_main, tail = jnp.pad(flat, (0, LANES - n)), None   # one tiny row
    else:
        main = (n // LANES) * LANES
        flat_main, tail = flat[:main], flat[main:]

    rows = flat_main.shape[0] // LANES
    out_main = _scale_shift_pallas(flat_main.reshape(rows, LANES), w2, b2).reshape(-1)

    if tail is not None:
        out_tail = (tail.astype(jnp.float32) * w2[0, 0] + b2[0, 0]).astype(compute_dtype)
        out_flat = jnp.concatenate([out_main, out_tail])
    elif out_main.shape[0] != n:
        out_flat = out_main[:n]          # only the tiny (n < 128) padded path
    else:
        out_flat = out_main

    return out_flat.reshape(n, 1).astype(x.dtype)


simple_nn_forward = jax.jit(_simple_nn_forward)


if __name__ == "__main__":
    key = jax.random.PRNGKey(0)
    kx, kw, kb, kx2, kx3 = jax.random.split(key, 5)

    # Deterministic parameters (shapes from nn.Linear(1, 1)).
    weight = jax.random.uniform(kw, (1, 1), jnp.float32, minval=-1.0, maxval=1.0)
    bias = jax.random.uniform(kb, (1,), jnp.float32, minval=-1.0, maxval=1.0)

    def check(xv):
        y = jax.block_until_ready(simple_nn_forward(xv, weight, bias))
        y_ref = xv @ weight.T + bias
        assert y.shape == xv.shape
        assert jnp.allclose(y, y_ref, atol=1e-5, rtol=1e-5)

    # Module-spec small batch (8, 1): one padded 128-lane row through the kernel.
    check(jax.random.normal(kx, (8, 1), jnp.float32))
    # 128-aligned batch: zero-copy wrapper, 2 grid steps (both TCs on v7x).
    check(jax.random.normal(kx2, (2048, 1), jnp.float32))
    # Ragged batch: kernel on the aligned 896-element prefix, XLA on the tail.
    check(jax.random.normal(kx3, (1000, 1), jnp.float32))

    print("KERNEL_OK")
</pallas_src>

<mosaic_0001>
module attributes {stable_mosaic.version = 11 : i64} {
  func.func @scale_shift_kernel(%arg0: i32, %arg1: memref<1x1xf32, #tpu.memory_space<smem>>, %arg2: memref<1x1xf32, #tpu.memory_space<smem>>, %arg3: memref<1x128xf32, #tpu.memory_space<vmem>>, %arg4: memref<1x128xf32, #tpu.memory_space<vmem>>) attributes {dimension_semantics = [#tpu.dimension_semantics<parallel>], iteration_bounds = array<i64: 1>, scalar_prefetch = 0 : i64, scratch_operands = 0 : i64, tpu.core_type = #tpu.core_type<tc>, window_params = [{transform_indices = @transform_0, window_bounds = array<i64: 1, 1>}, {transform_indices = @transform_1, window_bounds = array<i64: 1, 1>}, {transform_indices = @transform_2, window_bounds = array<i64: 1, 128>}, {transform_indices = @transform_3, window_bounds = array<i64: 1, 128>}]} {
    %c0 = arith.constant 0 : index
    %c0_0 = arith.constant 0 : index
    %0 = memref.load %arg1[%c0, %c0_0] : memref<1x1xf32, #tpu.memory_space<smem>>
    %c0_1 = arith.constant 0 : index
    %c0_2 = arith.constant 0 : index
    %1 = memref.load %arg2[%c0_1, %c0_2] : memref<1x1xf32, #tpu.memory_space<smem>>
    %c0_3 = arith.constant 0 : index
    %c0_4 = arith.constant 0 : index
    %2 = vector.load %arg3[%c0_3, %c0_4] : memref<1x128xf32, #tpu.memory_space<vmem>>, vector<1x128xf32>
    %3 = vector.broadcast %0 : f32 to vector<1x128xf32>
    %4 = arith.mulf %2, %3 : vector<1x128xf32>
    %5 = vector.broadcast %1 : f32 to vector<1x128xf32>
    %6 = arith.addf %4, %5 : vector<1x128xf32>
    %c0_5 = arith.constant 0 : index
    %c0_6 = arith.constant 0 : index
    %7 = vector.load %arg4[%c0_5, %c0_6] : memref<1x128xf32, #tpu.memory_space<vmem>>, vector<1x128xf32>
    tpu.vector_store %arg4[%c0_5, %c0_6], %6 {strides = array<i32>} : memref<1x128xf32, #tpu.memory_space<vmem>>, vector<1x128xf32>,
    return
  }
  func.func @transform_0(%arg0: i32) -> (i32, i32) {
    %c0_i32 = arith.constant 0 : i32
    %c0_i32_0 = arith.constant 0 : i32
    %c0_i32_1 = arith.constant 0 : i32
    return %c0_i32, %c0_i32_0 : i32, i32
  }
  func.func @transform_1(%arg0: i32) -> (i32, i32) {
    %c0_i32 = arith.constant 0 : i32
    %c0_i32_0 = arith.constant 0 : i32
    %c0_i32_1 = arith.constant 0 : i32
    return %c0_i32, %c0_i32_0 : i32, i32
  }
  func.func @transform_2(%arg0: i32) -> (i32, i32) {
    %c0_i32 = arith.constant 0 : i32
    %c0_i32_0 = arith.constant 0 : i32
    return %arg0, %c0_i32 : i32, i32
  }
  func.func @transform_3(%arg0: i32) -> (i32, i32) {
    %c0_i32 = arith.constant 0 : i32
    %c0_i32_0 = arith.constant 0 : i32
    return %arg0, %c0_i32 : i32, i32
  }
}

</mosaic_0001>

<bundles_post_ra>
// kernel: _simple_nn_forward.1
= control target key start
LH: loop header
LB: loop body
LE: loop exit
PB: predicated region body
PF: predicated region fallthrough
CT: control target
= control target key end

     0   :  { %s60_s0 = inlined_call_operand.<no memory space> [shape: f32[1,1], index: 0, kind: input, shape index: {}]   ;;  %s61_s1 = inlined_call_operand.<no memory space> [shape: f32[1,1], index: 1, kind: input, shape index: {}]   ;;  %s62_s2 = inlined_call_operand.vmem [shape: f32[1,128], index: 2, kind: input, shape index: {}]   ;;  %s63_s3 = inlined_call_operand.vmem [shape: f32[1,128], index: 3, kind: output, shape index: {}]  }
   0x1   :  { %v18_v0 = vld [vmem:[%s62_s2] sm:$0x1]  ;;  %v19_v1 = vstv %s60_s0  ;;  %v21_v2 = vstv %s61_s1 }
   0x2   :  { %v20_v3 = vmul.f32 %v19_v1, %v18_v0 }
   0x4   :  { %v22_v4 = vadd.f32 %v21_v2, %v20_v3 }
   0x6   :  { %23 = vst [vmem:[%s63_s3] sm:$0x1] %v22_v4 }

</bundles_post_ra>
